<compile_context>
chip_gen: v7x
topology: tpu7x:2x2x1
jax: 0.10.0
libtpu: 0.0.40
codegen_flags: <defaults>
</compile_context>

<pallas_src>
import jax
import jax.numpy as jnp
import numpy as np
from jax.experimental import pallas as pl
from jax.experimental.pallas import tpu as pltpu  # noqa: F401 (kept for future pipelining)

# ---- config (small, consistent with the module) ----
B = 2            # batch
T = 8            # num_tokens (== context_length)
E = 32           # emb_dim
H = 4            # n_heads
HD = E // H      # head_dim
FF = 4 * E       # hidden dim of FeedForward (= 128, one lane tile)
EPS = 1e-5
NEG_BIG = -1e30  # large finite negative (robust even under max-subtraction)


def transformer_block_kernel(
    x_ref,       # (B*T, E)
    wqkv_ref,    # (E, 3E)      == [Wq/sqrt(HD) | Wk | Wv]
    w_fo_ref,    # (E, FF + E)  == [W1 | Wo]   (both slices start lane-aligned)
    w2_ref,      # (FF, E)
    vecs_ref,    # (8, FF): rows 0..5 = ln1_s, ln1_b, ln2_s, ln2_b, bo, b2 (lanes :E)
                 #          row 6 = b1 (lanes :FF), row 7 = zeros
    out_ref,     # (B*T, E)
):
    x = x_ref[...].astype(jnp.float32)                            # (BT, E)

    # unpack the small vectors (static sublane/lane slices -> cheap vector loads)
    ln1_s = vecs_ref[0:1, :E]
    ln1_b = vecs_ref[1:2, :E]
    ln2_s = vecs_ref[2:3, :E]
    ln2_b = vecs_ref[3:4, :E]
    bo = vecs_ref[4:5, :E]
    b2 = vecs_ref[5:6, :E]
    b1 = vecs_ref[6:7, :]                                         # (1, FF)

    w1 = w_fo_ref[:, :FF]                                         # (E, FF)
    wo = w_fo_ref[:, FF:FF + E]                                   # (E, E)

    def layer_norm(v, s, b):
        mean = jnp.mean(v, axis=-1, keepdims=True)
        var = jnp.mean((v - mean) ** 2, axis=-1, keepdims=True)   # unbiased=False
        inv = jax.lax.rsqrt(var + EPS)
        return (v - mean) * inv * s + b                           # (1,E) broadcasts

    # ---------------- attention sub-block ----------------
    h = layer_norm(x, ln1_s, ln1_b)                               # (BT, E)
    qkv = jnp.dot(h, wqkv_ref[...], preferred_element_type=jnp.float32)  # (BT, 3E)
    # split + unflatten batch (tile-aligned reshape: 16 rows -> (2, 8) rows)
    q = qkv[:, 0 * E:1 * E].reshape(B, T, E)                      # already scaled by 1/sqrt(HD)
    k = qkv[:, 1 * E:2 * E].reshape(B, T, E)
    v = qkv[:, 2 * E:3 * E].reshape(B, T, E)

    # additive causal mask, built once for all heads
    row = jax.lax.broadcasted_iota(jnp.int32, (B, T, T), 1)
    col = jax.lax.broadcasted_iota(jnp.int32, (B, T, T), 2)
    neg_mask = jnp.where(col > row, NEG_BIG, 0.0).astype(jnp.float32)

    ctx_heads = []
    for hh in range(H):                                           # static loop over heads
        sl = slice(hh * HD, (hh + 1) * HD)
        qh, kh, vh = q[:, :, sl], k[:, :, sl], v[:, :, sl]        # (B, T, HD)
        # scores: batched over B, contract head_dim (no explicit transpose of kh)
        s = jax.lax.dot_general(qh, kh, (((2,), (2,)), ((0,), (0,))),
                                preferred_element_type=jnp.float32)   # (B, T, T)
        s = s + neg_mask
        s = s - jnp.max(s, axis=-1, keepdims=True)
        p = jnp.exp(s)
        denom = jnp.sum(p, axis=-1, keepdims=True)
        p = p * pl.reciprocal(denom, approx=False)                # exact reciprocal
        # TODO(synk): attention dropout omitted (eval-mode identity)
        ctx_heads.append(
            jax.lax.dot_general(p, vh, (((2,), (1,)), ((0,), (0,))),
                                preferred_element_type=jnp.float32))  # (B, T, HD)
    ctx = jnp.concatenate(ctx_heads, axis=-1).reshape(B * T, E)   # (BT, E)

    attn = jnp.dot(ctx, wo, preferred_element_type=jnp.float32) + bo
    # TODO(synk): shortcut dropout omitted (eval-mode identity)
    x1 = x + attn                                                 # residual 1

    # ---------------- feed-forward sub-block ----------------
    h2 = layer_norm(x1, ln2_s, ln2_b)
    z = jnp.dot(h2, w1, preferred_element_type=jnp.float32) + b1  # (BT, FF)
    z3 = z * z * z
    g = 0.5 * z * (1.0 + jnp.tanh(jnp.sqrt(2.0 / jnp.pi) * (z + 0.044715 * z3)))
    ff = jnp.dot(g, w2_ref[...], preferred_element_type=jnp.float32) + b2

    out_ref[...] = (x1 + ff).astype(out_ref.dtype)                # residual 2


def transformer_block(x, params):
    (ln1_s, ln1_b, wq, wk, wv, wo, bo, ln2_s, ln2_b, w1, b1, w2, b2) = params
    b, t, e = x.shape

    # Host-side packing: fold 1/sqrt(head_dim) into Wq, fuse QKV into one matmul
    # operand, pack [W1 | Wo] into one operand (both slices lane-tile aligned),
    # and pack every small vector into a single (8, FF) f32 tile.
    wqkv = jnp.concatenate([wq * (1.0 / (HD ** 0.5)), wk, wv], axis=1)   # (E, 3E)
    w_fo = jnp.concatenate([w1, wo], axis=1)                             # (E, FF+E)
    vecs = jnp.zeros((8, FF), jnp.float32)
    vecs = vecs.at[0, :E].set(ln1_s[0])
    vecs = vecs.at[1, :E].set(ln1_b[0])
    vecs = vecs.at[2, :E].set(ln2_s[0])
    vecs = vecs.at[3, :E].set(ln2_b[0])
    vecs = vecs.at[4, :E].set(bo[0])
    vecs = vecs.at[5, :E].set(b2[0])
    vecs = vecs.at[6, :].set(b1[0])

    x2 = x.reshape(b * t, e)   # 16 rows = two full f32 sublane tiles
    out2 = pl.pallas_call(
        transformer_block_kernel,
        out_shape=jax.ShapeDtypeStruct((b * t, e), jnp.float32),
        # No grid: single invocation; every operand is mapped whole into VMEM,
        # so there is no pipeline / double-buffering to configure.
    )(x2, wqkv, w_fo, w2, vecs)
    return out2.reshape(b, t, e)


def reference_block(x, params):
    """Pure-JAX reference mirroring the PyTorch forward (eval mode)."""
    (ln1_s, ln1_b, wq, wk, wv, wo, bo, ln2_s, ln2_b, w1, b1, w2, b2) = params

    def ln(v, s, sh):
        m = v.mean(-1, keepdims=True)
        var = ((v - m) ** 2).mean(-1, keepdims=True)
        return (v - m) / jnp.sqrt(var + EPS) * s + sh

    h = ln(x, ln1_s, ln1_b)
    q = h @ wq
    k = h @ wk
    v = h @ wv
    q = q.reshape(B, T, H, HD).transpose(0, 2, 1, 3)
    k = k.reshape(B, T, H, HD).transpose(0, 2, 1, 3)
    v = v.reshape(B, T, H, HD).transpose(0, 2, 1, 3)
    scores = jnp.einsum('bhqd,bhkd->bhqk', q, k)
    mask = jnp.triu(jnp.ones((T, T), bool), k=1)
    scores = jnp.where(mask, -jnp.inf, scores)
    w = jax.nn.softmax(scores / (HD ** 0.5), axis=-1)
    ctx = jnp.einsum('bhqk,bhkd->bhqd', w, v).transpose(0, 2, 1, 3).reshape(B, T, E)
    attn = ctx @ wo + bo
    x1 = x + attn
    h2 = ln(x1, ln2_s, ln2_b)
    z = h2 @ w1 + b1
    g = 0.5 * z * (1.0 + jnp.tanh(jnp.sqrt(2.0 / jnp.pi) * (z + 0.044715 * z ** 3)))
    return x1 + (g @ w2 + b2)


if __name__ == "__main__":
    key = jax.random.PRNGKey(0)
    keys = jax.random.split(key, 8)

    x = jax.random.normal(keys[0], (B, T, E), dtype=jnp.float32)

    scale = 0.05
    params = (
        jnp.ones((1, E), jnp.float32),                                   # ln1 scale
        jnp.zeros((1, E), jnp.float32),                                  # ln1 shift
        scale * jax.random.normal(keys[1], (E, E), jnp.float32),         # Wq
        scale * jax.random.normal(keys[2], (E, E), jnp.float32),         # Wk
        scale * jax.random.normal(keys[3], (E, E), jnp.float32),         # Wv
        scale * jax.random.normal(keys[4], (E, E), jnp.float32),         # Wo (out_proj)
        scale * jax.random.normal(keys[5], (1, E), jnp.float32),         # bo
        jnp.ones((1, E), jnp.float32),                                   # ln2 scale
        jnp.zeros((1, E), jnp.float32),                                  # ln2 shift
        scale * jax.random.normal(keys[6], (E, FF), jnp.float32),        # W1
        jnp.zeros((1, FF), jnp.float32),                                 # b1
        scale * jax.random.normal(keys[7], (FF, E), jnp.float32),        # W2
        jnp.zeros((1, E), jnp.float32),                                  # b2
    )

    out = transformer_block(x, params)
    jax.block_until_ready(out)

    ref = reference_block(x, params)
    np.testing.assert_allclose(np.asarray(out), np.asarray(ref), rtol=1e-5, atol=1e-5)

    print("KERNEL_OK")
</pallas_src>

<mosaic_0001>
module attributes {stable_mosaic.version = 11 : i64} {
  func.func @transformer_block_kernel(%arg0: memref<16x32xf32, #tpu.memory_space<vmem>>, %arg1: memref<32x96xf32, #tpu.memory_space<vmem>>, %arg2: memref<32x160xf32, #tpu.memory_space<vmem>>, %arg3: memref<128x32xf32, #tpu.memory_space<vmem>>, %arg4: memref<8x128xf32, #tpu.memory_space<vmem>>, %arg5: memref<16x32xf32, #tpu.memory_space<vmem>>) attributes {dimension_semantics = [], scalar_prefetch = 0 : i64, scratch_operands = 0 : i64, tpu.core_type = #tpu.core_type<tc>} {
    %c0 = arith.constant 0 : index
    %c0_0 = arith.constant 0 : index
    %0 = vector.load %arg0[%c0, %c0_0] : memref<16x32xf32, #tpu.memory_space<vmem>>, vector<16x32xf32>
    %c0_1 = arith.constant 0 : index
    %c0_2 = arith.constant 0 : index
    %1 = vector.load %arg4[%c0_1, %c0_2] : memref<8x128xf32, #tpu.memory_space<vmem>>, vector<1x32xf32>
    %c1 = arith.constant 1 : index
    %c0_3 = arith.constant 0 : index
    %2 = vector.load %arg4[%c1, %c0_3] : memref<8x128xf32, #tpu.memory_space<vmem>>, vector<1x32xf32>
    %c2 = arith.constant 2 : index
    %c0_4 = arith.constant 0 : index
    %3 = vector.load %arg4[%c2, %c0_4] : memref<8x128xf32, #tpu.memory_space<vmem>>, vector<1x32xf32>
    %c3 = arith.constant 3 : index
    %c0_5 = arith.constant 0 : index
    %4 = vector.load %arg4[%c3, %c0_5] : memref<8x128xf32, #tpu.memory_space<vmem>>, vector<1x32xf32>
    %c4 = arith.constant 4 : index
    %c0_6 = arith.constant 0 : index
    %5 = vector.load %arg4[%c4, %c0_6] : memref<8x128xf32, #tpu.memory_space<vmem>>, vector<1x32xf32>
    %c5 = arith.constant 5 : index
    %c0_7 = arith.constant 0 : index
    %6 = vector.load %arg4[%c5, %c0_7] : memref<8x128xf32, #tpu.memory_space<vmem>>, vector<1x32xf32>
    %c6 = arith.constant 6 : index
    %c0_8 = arith.constant 0 : index
    %7 = vector.load %arg4[%c6, %c0_8] : memref<8x128xf32, #tpu.memory_space<vmem>>, vector<1x128xf32>
    %c0_9 = arith.constant 0 : index
    %c0_10 = arith.constant 0 : index
    %8 = vector.load %arg2[%c0_9, %c0_10] : memref<32x160xf32, #tpu.memory_space<vmem>>, vector<32x128xf32>
    %c0_11 = arith.constant 0 : index
    %c128 = arith.constant 128 : index
    %9 = vector.load %arg2[%c0_11, %c128] : memref<32x160xf32, #tpu.memory_space<vmem>>, vector<32x32xf32>
    %cst = arith.constant dense<0.000000e+00> : vector<16xf32>
    %10 = vector.multi_reduction <add>, %0, %cst [1] : vector<16x32xf32> to vector<16xf32>
    %11 = vector.shape_cast %10 : vector<16xf32> to vector<16x1xf32>
    %cst_12 = arith.constant 3.200000e+01 : f32
    %12 = vector.broadcast %cst_12 : f32 to vector<16x1xf32>
    %13 = arith.divf %11, %12 : vector<16x1xf32>
    %14 = vector.broadcast %13 : vector<16x1xf32> to vector<16x32xf32>
    %15 = arith.subf %0, %14 : vector<16x32xf32>
    %16 = arith.mulf %15, %15 : vector<16x32xf32>
    %cst_13 = arith.constant dense<0.000000e+00> : vector<16xf32>
    %17 = vector.multi_reduction <add>, %16, %cst_13 [1] : vector<16x32xf32> to vector<16xf32>
    %18 = vector.shape_cast %17 : vector<16xf32> to vector<16x1xf32>
    %cst_14 = arith.constant 3.200000e+01 : f32
    %19 = vector.broadcast %cst_14 : f32 to vector<16x1xf32>
    %20 = arith.divf %18, %19 : vector<16x1xf32>
    %cst_15 = arith.constant 9.99999974E-6 : f32
    %21 = vector.broadcast %cst_15 : f32 to vector<16x1xf32>
    %22 = arith.addf %20, %21 : vector<16x1xf32>
    %23 = math.rsqrt %22 : vector<16x1xf32>
    %24 = vector.broadcast %13 : vector<16x1xf32> to vector<16x32xf32>
    %25 = arith.subf %0, %24 : vector<16x32xf32>
    %26 = vector.broadcast %23 : vector<16x1xf32> to vector<16x32xf32>
    %27 = arith.mulf %25, %26 : vector<16x32xf32>
    %28 = vector.broadcast %1 : vector<1x32xf32> to vector<16x32xf32>
    %29 = arith.mulf %27, %28 : vector<16x32xf32>
    %30 = vector.broadcast %2 : vector<1x32xf32> to vector<16x32xf32>
    %31 = arith.addf %29, %30 : vector<16x32xf32>
    %c0_16 = arith.constant 0 : index
    %c0_17 = arith.constant 0 : index
    %32 = vector.load %arg1[%c0_16, %c0_17] : memref<32x96xf32, #tpu.memory_space<vmem>>, vector<32x96xf32>
    %cst_18 = arith.constant dense<0.000000e+00> : vector<16x96xf32>
    %33 = tpu.matmul %31, %32, %cst_18 {dimension_numbers = #tpu.dot_dimension_numbers<[1], [0], [0], [1], [0, 0, 1, 1], [], []>} : vector<16x32xf32>, vector<32x96xf32>, vector<16x96xf32> -> vector<16x96xf32>
    %34 = vector.extract_strided_slice %33 {offsets = [0, 0], sizes = [16, 32], strides = [1, 1]} : vector<16x96xf32> to vector<16x32xf32>
    %35 = vector.shape_cast %34 : vector<16x32xf32> to vector<2x8x32xf32>
    %36 = vector.extract_strided_slice %33 {offsets = [0, 32], sizes = [16, 32], strides = [1, 1]} : vector<16x96xf32> to vector<16x32xf32>
    %37 = vector.shape_cast %36 : vector<16x32xf32> to vector<2x8x32xf32>
    %38 = vector.extract_strided_slice %33 {offsets = [0, 64], sizes = [16, 32], strides = [1, 1]} : vector<16x96xf32> to vector<16x32xf32>
    %39 = vector.shape_cast %38 : vector<16x32xf32> to vector<2x8x32xf32>
    %40 = tpu.iota {dimensions = array<i32: 1>} : vector<2x8x8xi32>
    %41 = tpu.iota {dimensions = array<i32: 2>} : vector<2x8x8xi32>
    %42 = arith.cmpi sgt, %41, %40 : vector<2x8x8xi32>
    %cst_19 = arith.constant -1.000000e+30 : f32
    %cst_20 = arith.constant 0.000000e+00 : f32
    %43 = vector.broadcast %cst_19 : f32 to vector<2x8x8xf32>
    %44 = vector.broadcast %cst_20 : f32 to vector<2x8x8xf32>
    %45 = arith.select %42, %43, %44 : vector<2x8x8xi1>, vector<2x8x8xf32>
    %46 = vector.extract_strided_slice %35 {offsets = [0, 0, 0], sizes = [2, 8, 8], strides = [1, 1, 1]} : vector<2x8x32xf32> to vector<2x8x8xf32>
    %47 = vector.extract_strided_slice %37 {offsets = [0, 0, 0], sizes = [2, 8, 8], strides = [1, 1, 1]} : vector<2x8x32xf32> to vector<2x8x8xf32>
    %48 = vector.extract_strided_slice %39 {offsets = [0, 0, 0], sizes = [2, 8, 8], strides = [1, 1, 1]} : vector<2x8x32xf32> to vector<2x8x8xf32>
    %cst_21 = arith.constant dense<0.000000e+00> : vector<2x8x8xf32>
    %49 = tpu.matmul %46, %47, %cst_21 {dimension_numbers = #tpu.dot_dimension_numbers<[2], [2], [1], [1], [0, 0, 0, 1, 1, 1], [0], [0]>} : vector<2x8x8xf32>, vector<2x8x8xf32>, vector<2x8x8xf32> -> vector<2x8x8xf32>
    %50 = arith.addf %49, %45 : vector<2x8x8xf32>
    %cst_22 = arith.constant dense<0xFF800000> : vector<2x8xf32>
    %51 = vector.multi_reduction <maximumf>, %50, %cst_22 [2] : vector<2x8x8xf32> to vector<2x8xf32>
    %52 = vector.shape_cast %51 : vector<2x8xf32> to vector<2x8x1xf32>
    %53 = vector.broadcast %52 : vector<2x8x1xf32> to vector<2x8x8xf32>
    %54 = arith.subf %50, %53 : vector<2x8x8xf32>
    %55 = math.exp %54 : vector<2x8x8xf32>
    %cst_23 = arith.constant dense<0.000000e+00> : vector<2x8xf32>
    %56 = vector.multi_reduction <add>, %55, %cst_23 [2] : vector<2x8x8xf32> to vector<2x8xf32>
    %57 = vector.shape_cast %56 : vector<2x8xf32> to vector<2x8x1xf32>
    %58 = tpu.reciprocal %57 : vector<2x8x1xf32> -> vector<2x8x1xf32>
    %59 = vector.broadcast %58 : vector<2x8x1xf32> to vector<2x8x8xf32>
    %60 = arith.mulf %55, %59 : vector<2x8x8xf32>
    %cst_24 = arith.constant dense<0.000000e+00> : vector<2x8x8xf32>
    %61 = tpu.matmul %60, %48, %cst_24 {dimension_numbers = #tpu.dot_dimension_numbers<[2], [1], [1], [2], [0, 0, 0, 1, 1, 2], [0], [0]>} : vector<2x8x8xf32>, vector<2x8x8xf32>, vector<2x8x8xf32> -> vector<2x8x8xf32>
    %62 = vector.extract_strided_slice %35 {offsets = [0, 0, 8], sizes = [2, 8, 8], strides = [1, 1, 1]} : vector<2x8x32xf32> to vector<2x8x8xf32>
    %63 = vector.extract_strided_slice %37 {offsets = [0, 0, 8], sizes = [2, 8, 8], strides = [1, 1, 1]} : vector<2x8x32xf32> to vector<2x8x8xf32>
    %64 = vector.extract_strided_slice %39 {offsets = [0, 0, 8], sizes = [2, 8, 8], strides = [1, 1, 1]} : vector<2x8x32xf32> to vector<2x8x8xf32>
    %cst_25 = arith.constant dense<0.000000e+00> : vector<2x8x8xf32>
    %65 = tpu.matmul %62, %63, %cst_25 {dimension_numbers = #tpu.dot_dimension_numbers<[2], [2], [1], [1], [0, 0, 0, 1, 1, 1], [0], [0]>} : vector<2x8x8xf32>, vector<2x8x8xf32>, vector<2x8x8xf32> -> vector<2x8x8xf32>
    %66 = arith.addf %65, %45 : vector<2x8x8xf32>
    %cst_26 = arith.constant dense<0xFF800000> : vector<2x8xf32>
    %67 = vector.multi_reduction <maximumf>, %66, %cst_26 [2] : vector<2x8x8xf32> to vector<2x8xf32>
    %68 = vector.shape_cast %67 : vector<2x8xf32> to vector<2x8x1xf32>
    %69 = vector.broadcast %68 : vector<2x8x1xf32> to vector<2x8x8xf32>
    %70 = arith.subf %66, %69 : vector<2x8x8xf32>
    %71 = math.exp %70 : vector<2x8x8xf32>
    %cst_27 = arith.constant dense<0.000000e+00> : vector<2x8xf32>
    %72 = vector.multi_reduction <add>, %71, %cst_27 [2] : vector<2x8x8xf32> to vector<2x8xf32>
    %73 = vector.shape_cast %72 : vector<2x8xf32> to vector<2x8x1xf32>
    %74 = tpu.reciprocal %73 : vector<2x8x1xf32> -> vector<2x8x1xf32>
    %75 = vector.broadcast %74 : vector<2x8x1xf32> to vector<2x8x8xf32>
    %76 = arith.mulf %71, %75 : vector<2x8x8xf32>
    %cst_28 = arith.constant dense<0.000000e+00> : vector<2x8x8xf32>
    %77 = tpu.matmul %76, %64, %cst_28 {dimension_numbers = #tpu.dot_dimension_numbers<[2], [1], [1], [2], [0, 0, 0, 1, 1, 2], [0], [0]>} : vector<2x8x8xf32>, vector<2x8x8xf32>, vector<2x8x8xf32> -> vector<2x8x8xf32>
    %78 = vector.extract_strided_slice %35 {offsets = [0, 0, 16], sizes = [2, 8, 8], strides = [1, 1, 1]} : vector<2x8x32xf32> to vector<2x8x8xf32>
    %79 = vector.extract_strided_slice %37 {offsets = [0, 0, 16], sizes = [2, 8, 8], strides = [1, 1, 1]} : vector<2x8x32xf32> to vector<2x8x8xf32>
    %80 = vector.extract_strided_slice %39 {offsets = [0, 0, 16], sizes = [2, 8, 8], strides = [1, 1, 1]} : vector<2x8x32xf32> to vector<2x8x8xf32>
    %cst_29 = arith.constant dense<0.000000e+00> : vector<2x8x8xf32>
    %81 = tpu.matmul %78, %79, %cst_29 {dimension_numbers = #tpu.dot_dimension_numbers<[2], [2], [1], [1], [0, 0, 0, 1, 1, 1], [0], [0]>} : vector<2x8x8xf32>, vector<2x8x8xf32>, vector<2x8x8xf32> -> vector<2x8x8xf32>
    %82 = arith.addf %81, %45 : vector<2x8x8xf32>
    %cst_30 = arith.constant dense<0xFF800000> : vector<2x8xf32>
    %83 = vector.multi_reduction <maximumf>, %82, %cst_30 [2] : vector<2x8x8xf32> to vector<2x8xf32>
    %84 = vector.shape_cast %83 : vector<2x8xf32> to vector<2x8x1xf32>
    %85 = vector.broadcast %84 : vector<2x8x1xf32> to vector<2x8x8xf32>
    %86 = arith.subf %82, %85 : vector<2x8x8xf32>
    %87 = math.exp %86 : vector<2x8x8xf32>
    %cst_31 = arith.constant dense<0.000000e+00> : vector<2x8xf32>
    %88 = vector.multi_reduction <add>, %87, %cst_31 [2] : vector<2x8x8xf32> to vector<2x8xf32>
    %89 = vector.shape_cast %88 : vector<2x8xf32> to vector<2x8x1xf32>
    %90 = tpu.reciprocal %89 : vector<2x8x1xf32> -> vector<2x8x1xf32>
    %91 = vector.broadcast %90 : vector<2x8x1xf32> to vector<2x8x8xf32>
    %92 = arith.mulf %87, %91 : vector<2x8x8xf32>
    %cst_32 = arith.constant dense<0.000000e+00> : vector<2x8x8xf32>
    %93 = tpu.matmul %92, %80, %cst_32 {dimension_numbers = #tpu.dot_dimension_numbers<[2], [1], [1], [2], [0, 0, 0, 1, 1, 2], [0], [0]>} : vector<2x8x8xf32>, vector<2x8x8xf32>, vector<2x8x8xf32> -> vector<2x8x8xf32>
    %94 = vector.extract_strided_slice %35 {offsets = [0, 0, 24], sizes = [2, 8, 8], strides = [1, 1, 1]} : vector<2x8x32xf32> to vector<2x8x8xf32>
    %95 = vector.extract_strided_slice %37 {offsets = [0, 0, 24], sizes = [2, 8, 8], strides = [1, 1, 1]} : vector<2x8x32xf32> to vector<2x8x8xf32>
    %96 = vector.extract_strided_slice %39 {offsets = [0, 0, 24], sizes = [2, 8, 8], strides = [1, 1, 1]} : vector<2x8x32xf32> to vector<2x8x8xf32>
    %cst_33 = arith.constant dense<0.000000e+00> : vector<2x8x8xf32>
    %97 = tpu.matmul %94, %95, %cst_33 {dimension_numbers = #tpu.dot_dimension_numbers<[2], [2], [1], [1], [0, 0, 0, 1, 1, 1], [0], [0]>} : vector<2x8x8xf32>, vector<2x8x8xf32>, vector<2x8x8xf32> -> vector<2x8x8xf32>
    %98 = arith.addf %97, %45 : vector<2x8x8xf32>
    %cst_34 = arith.constant dense<0xFF800000> : vector<2x8xf32>
    %99 = vector.multi_reduction <maximumf>, %98, %cst_34 [2] : vector<2x8x8xf32> to vector<2x8xf32>
    %100 = vector.shape_cast %99 : vector<2x8xf32> to vector<2x8x1xf32>
    %101 = vector.broadcast %100 : vector<2x8x1xf32> to vector<2x8x8xf32>
    %102 = arith.subf %98, %101 : vector<2x8x8xf32>
    %103 = math.exp %102 : vector<2x8x8xf32>
    %cst_35 = arith.constant dense<0.000000e+00> : vector<2x8xf32>
    %104 = vector.multi_reduction <add>, %103, %cst_35 [2] : vector<2x8x8xf32> to vector<2x8xf32>
    %105 = vector.shape_cast %104 : vector<2x8xf32> to vector<2x8x1xf32>
    %106 = tpu.reciprocal %105 : vector<2x8x1xf32> -> vector<2x8x1xf32>
    %107 = vector.broadcast %106 : vector<2x8x1xf32> to vector<2x8x8xf32>
    %108 = arith.mulf %103, %107 : vector<2x8x8xf32>
    %cst_36 = arith.constant dense<0.000000e+00> : vector<2x8x8xf32>
    %109 = tpu.matmul %108, %96, %cst_36 {dimension_numbers = #tpu.dot_dimension_numbers<[2], [1], [1], [2], [0, 0, 0, 1, 1, 2], [0], [0]>} : vector<2x8x8xf32>, vector<2x8x8xf32>, vector<2x8x8xf32> -> vector<2x8x8xf32>
    %110 = tpu.concatenate %61, %77, %93, %109 in 2 : vector<2x8x8xf32>, vector<2x8x8xf32>, vector<2x8x8xf32>, vector<2x8x8xf32> -> vector<2x8x32xf32>
    %111 = vector.shape_cast %110 : vector<2x8x32xf32> to vector<16x32xf32>
    %cst_37 = arith.constant dense<0.000000e+00> : vector<16x32xf32>
    %112 = tpu.matmul %111, %9, %cst_37 {dimension_numbers = #tpu.dot_dimension_numbers<[1], [0], [0], [1], [0, 0, 1, 1], [], []>} : vector<16x32xf32>, vector<32x32xf32>, vector<16x32xf32> -> vector<16x32xf32>
    %113 = vector.broadcast %5 : vector<1x32xf32> to vector<16x32xf32>
    %114 = arith.addf %112, %113 : vector<16x32xf32>
    %115 = arith.addf %0, %114 : vector<16x32xf32>
    %cst_38 = arith.constant dense<0.000000e+00> : vector<16xf32>
    %116 = vector.multi_reduction <add>, %115, %cst_38 [1] : vector<16x32xf32> to vector<16xf32>
    %117 = vector.shape_cast %116 : vector<16xf32> to vector<16x1xf32>
    %cst_39 = arith.constant 3.200000e+01 : f32
    %118 = vector.broadcast %cst_39 : f32 to vector<16x1xf32>
    %119 = arith.divf %117, %118 : vector<16x1xf32>
    %120 = vector.broadcast %119 : vector<16x1xf32> to vector<16x32xf32>
    %121 = arith.subf %115, %120 : vector<16x32xf32>
    %122 = arith.mulf %121, %121 : vector<16x32xf32>
    %cst_40 = arith.constant dense<0.000000e+00> : vector<16xf32>
    %123 = vector.multi_reduction <add>, %122, %cst_40 [1] : vector<16x32xf32> to vector<16xf32>
    %124 = vector.shape_cast %123 : vector<16xf32> to vector<16x1xf32>
    %cst_41 = arith.constant 3.200000e+01 : f32
    %125 = vector.broadcast %cst_41 : f32 to vector<16x1xf32>
    %126 = arith.divf %124, %125 : vector<16x1xf32>
    %cst_42 = arith.constant 9.99999974E-6 : f32
    %127 = vector.broadcast %cst_42 : f32 to vector<16x1xf32>
    %128 = arith.addf %126, %127 : vector<16x1xf32>
    %129 = math.rsqrt %128 : vector<16x1xf32>
    %130 = vector.broadcast %119 : vector<16x1xf32> to vector<16x32xf32>
    %131 = arith.subf %115, %130 : vector<16x32xf32>
    %132 = vector.broadcast %129 : vector<16x1xf32> to vector<16x32xf32>
    %133 = arith.mulf %131, %132 : vector<16x32xf32>
    %134 = vector.broadcast %3 : vector<1x32xf32> to vector<16x32xf32>
    %135 = arith.mulf %133, %134 : vector<16x32xf32>
    %136 = vector.broadcast %4 : vector<1x32xf32> to vector<16x32xf32>
    %137 = arith.addf %135, %136 : vector<16x32xf32>
    %cst_43 = arith.constant dense<0.000000e+00> : vector<16x128xf32>
    %138 = tpu.matmul %137, %8, %cst_43 {dimension_numbers = #tpu.dot_dimension_numbers<[1], [0], [0], [1], [0, 0, 1, 1], [], []>} : vector<16x32xf32>, vector<32x128xf32>, vector<16x128xf32> -> vector<16x128xf32>
    %139 = vector.broadcast %7 : vector<1x128xf32> to vector<16x128xf32>
    %140 = arith.addf %138, %139 : vector<16x128xf32>
    %141 = arith.mulf %140, %140 : vector<16x128xf32>
    %142 = arith.mulf %141, %140 : vector<16x128xf32>
    %cst_44 = arith.constant 5.000000e-01 : f32
    %143 = vector.broadcast %cst_44 : f32 to vector<16x128xf32>
    %144 = arith.mulf %143, %140 : vector<16x128xf32>
    %cst_45 = arith.constant 0.636619746 : f32
    %145 = math.sqrt %cst_45 : f32
    %cst_46 = arith.constant 4.471500e-02 : f32
    %146 = vector.broadcast %cst_46 : f32 to vector<16x128xf32>
    %147 = arith.mulf %146, %142 : vector<16x128xf32>
    %148 = arith.addf %140, %147 : vector<16x128xf32>
    %149 = vector.broadcast %145 : f32 to vector<16x128xf32>
    %150 = arith.mulf %149, %148 : vector<16x128xf32>
    %151 = math.tanh %150 : vector<16x128xf32>
    %cst_47 = arith.constant 1.000000e+00 : f32
    %152 = vector.broadcast %cst_47 : f32 to vector<16x128xf32>
    %153 = arith.addf %152, %151 : vector<16x128xf32>
    %154 = arith.mulf %144, %153 : vector<16x128xf32>
    %c0_48 = arith.constant 0 : index
    %c0_49 = arith.constant 0 : index
    %155 = vector.load %arg3[%c0_48, %c0_49] : memref<128x32xf32, #tpu.memory_space<vmem>>, vector<128x32xf32>
    %cst_50 = arith.constant dense<0.000000e+00> : vector<16x32xf32>
    %156 = tpu.matmul %154, %155, %cst_50 {dimension_numbers = #tpu.dot_dimension_numbers<[1], [0], [0], [1], [0, 0, 1, 1], [], []>} : vector<16x128xf32>, vector<128x32xf32>, vector<16x32xf32> -> vector<16x32xf32>
    %157 = vector.broadcast %6 : vector<1x32xf32> to vector<16x32xf32>
    %158 = arith.addf %156, %157 : vector<16x32xf32>
    %159 = arith.addf %115, %158 : vector<16x32xf32>
    %c0_51 = arith.constant 0 : index
    %c0_52 = arith.constant 0 : index
    %160 = vector.load %arg5[%c0_51, %c0_52] : memref<16x32xf32, #tpu.memory_space<vmem>>, vector<16x32xf32>
    tpu.vector_store %arg5[%c0_51, %c0_52], %159 {strides = array<i32>} : memref<16x32xf32, #tpu.memory_space<vmem>>, vector<16x32xf32>,
    return
  }
}

</mosaic_0001>

<bundles_post_ra>
// kernel: tpu_custom_call.1
= control target key start
LH: loop header
LB: loop body
LE: loop exit
PB: predicated region body
PF: predicated region fallthrough
CT: control target
= control target key end

     0   :  { %vm38_vm0 = vcmask 261120   ;;  %s2609_s0 = inlined_call_operand.vmem [shape: f32[16,32], index: 0, kind: input, shape index: {}]   ;;  %s2610_s1 = inlined_call_operand.vmem [shape: f32[32,96], index: 1, kind: input, shape index: {}]   ;;  %s2611_s2 = inlined_call_operand.vmem [shape: f32[32,160], index: 2, kind: input, shape index: {}]   ;;  %s2612_s3 = inlined_call_operand.vmem [shape: f32[128,32], index: 3, kind: input, shape index: {}]   ;;  %s2613_s4 = inlined_call_operand.vmem [shape: f32[8,128], index: 4, kind: input, shape index: {}]   ;;  %s2614_s5 = inlined_call_operand.hbm [shape: f32[16,32], index: 5, kind: output, shape index: {}]  }
   0x1   :  { %v2309_v0 = vld [vmem:[%s2609_s0] sm:$0xff]  ;;  %v2314_v1 = vld [vmem:[%s2609_s0 + $0x8] sm:$0xff] }
   0x2   :  { %10 = vsyncpa [#allocation3], 0  ;;  %v39_v2 = vsel %vm38_vm0, %v2309_v0, 0.0  ;;  %v42_v3 = vsel %vm38_vm0, %v2314_v1, 0.0  ;;  %v78_v14 = vld [vmem:[%s2610_s1] sm:$0xff]  ;;  %v79_v15 = vld [vmem:[%s2610_s1 + $0x8] sm:$0xff]  ;;  %v163_v41 = vlaneseq }
   0x3   :  { %40 = vadd.xlane.f32.xlu0 %v39_v2  ;;  %v80_v16 = vld [vmem:[%s2610_s1 + $0x10] sm:$0xff]  ;;  %v2116_v17 = vpack.c.bf16 %v79_v15, %v78_v14  ;;  %v81_v18 = vld [vmem:[%s2610_s1 + $0x18] sm:$0xff]  ;;  %v1863_v27 = vld [vmem:[%s2613_s4] ss:$0 sm:$0xff]  ;;  %v2258_v36 = vmov 0.0   ;;  %vm2259_vm1 = vmmov 0  }
   0x4   :  { %v2120_v19 = vpack.c.bf16 %v81_v18, %v80_v16  ;;  %v1864_v29 = vld [vmem:[%s2613_s4 + $0x1] ss:$0 sm:$0xff]  ;;  %1989 = vmatprep.subr.mxu0 %v2258_v36  ;;  %1991 = vmatprep.mubr.msk.f32.mxu0 %vm2259_vm1, %v2258_v36  ;;  %s2260_s7 = smov 96   ;;  %vm172_vm2 = vcmask 64512   ;;  %v164_v42 = vshrl.u32 %v163_v41, 7  ;;  %v166_v43 = vand.u32 127, %v163_v41 }
   0x5   :  { %2117 = vmatprep.subr.bf16.mxu1 %v2116_v17  ;;  %s2261_s8 = smov 64   ;;  %s2262_s9 = smov 88   ;;  %vm1517_vm4 = vcmask 195584   ;;  %vm1514_vm5 = vcmask 130048  }
   0x6   :  { %2119 = vmatpush3.bf16.msra.mxu1 %v2116_v17  ;;  %vm167_vm3 = vcmp.gt.s32.totalorder %v166_v43, %v164_v42  ;;  %s2263_s10 = smov 120   ;;  %s2264_s11 = smov 56  }
   0x7   :  { %43 = vadd.xlane.f32.xlu0 %v42_v3  ;;  %2121 = vmatprep.subr.bf16.mxu1 %v2120_v19  ;;  %v2369_v44 = vsel %vm167_vm3, -1e+30, %v2258_v36  ;;  %s2265_s12 = smov 80   ;;  %s2266_s13 = smov 112  }
   0x8   :  { %s2267_s14 = smov 48   ;;  %s2268_s15 = smov 72  }
   0x9   :  { %s2269_s16 = smov 104   ;;  %s2270_s17 = smov 40  }
   0xa   :  { %2123 = vmatpush3.bf16.msra.mxu1 %v2120_v19  ;;  %s2271_s18 = smov 8   ;;  %s2272_s19 = smov 16  }
   0xb   :  { %1979 = vmatprep.subr.mxu1 %v2258_v36  ;;  %s2273_s27 = smov 24   ;;  %s2274_s23 = smov [#allocation2]  }
   0xc   :  { %s1852_s24 = sshll.u32 %s2274_s23, 4  ;;  %s1853_s24 = int_to_ptr.vmem [resolvable:$true] %s1852_s24 }
   0xd   :  { %s2234_s25 = scalar_lea.vmem %s1853_s24, 256  ;;  %p2239_p1 = scmp.lt.s32.totalorder %s1853_s24, %s1853_s24 }
   0xe   :  { %p2235_p0 = scmp.ne.s32.totalorder %s1853_s24, %s2234_s25  ;;  %p2240_p2 = scmp.lt.s32.totalorder %s2234_s25, %s2234_s25 }
  0x10   :  { %p2241_p3 = por %p2240_p2, %p2239_p1 }
  0x12   :  { %p2242_p4 = pnand %p2241_p3, %p2235_p0 }
  0x90   :  { %v41_v4 = vpop.xlane.xlu0 %40 }
  0x91   :  { %v46_v5 = vmul.f32 0.03125, %v41_v4 }
  0x93   :  { %v48_v6 = vsub.f32 %v2309_v0, %v46_v5 }
  0x94   :  { %v44_v7 = vpop.xlane.xlu0 %43 }
  0x95   :  { %v47_v8 = vmul.f32 0.03125, %v44_v7  ;;  %v50_v9 = vmul.f32 %v48_v6, %v48_v6 }
  0x97   :  { %v49_v10 = vsub.f32 %v2314_v1, %v47_v8  ;;  %v52_v11 = vsel %vm38_vm0, %v50_v9, 0.0 }
  0x98   :  { %53 = vadd.xlane.f32.xlu1 %v52_v11 }
  0x99   :  { %v51_v12 = vmul.f32 %v49_v10, %v49_v10 }
  0x9b   :  { %v55_v13 = vsel %vm38_vm0, %v51_v12, 0.0 }
  0x9c   :  { %56 = vadd.xlane.f32.xlu1 %v55_v13 }
 0x125   :  { %v54_v20 = vpop.xlane.xlu1 %53 }
 0x126   :  { %v58_v21 = vmul.f32 0.03125, %v54_v20 }
 0x128   :  { %v60_v22 = vadd.f32 1e-05, %v58_v21 }
 0x129   :  { %v57_v23 = vpop.xlane.xlu1 %56 }
 0x12a   :  { %2190 = vrsqrt.f32 %v60_v22  ;;  %v59_v24 = vmul.f32 0.03125, %v57_v23 }
 0x12c   :  { %v61_v25 = vadd.f32 1e-05, %v59_v24 }
 0x12e   :  { %2192 = vrsqrt.f32 %v61_v25 }
 0x134   :  { %v2191_v26 = vpop.eup %2190 }
 0x135   :  { %v64_v28 = vmul.f32 %v2191_v26, %v48_v6 }
 0x137   :  { %v70_v30 = vmul.f32 %v1863_v27, %v64_v28 }
 0x138   :  { %v2193_v31 = vpop.eup %2192 }
 0x139   :  { %v65_v32 = vmul.f32 %v2193_v31, %v49_v10  ;;  %v76_v33 = vadd.f32 %v1864_v29, %v70_v30 }
 0x13b   :  { %v71_v34 = vmul.f32 %v1863_v27, %v65_v32  ;;  %1976 = vmatprep.mubr.msk.f32.mxu1 %vm38_vm0, %v76_v33 }
 0x13d   :  { %v77_v35 = vadd.f32 %v1864_v29, %v71_v34 }
 0x13f   :  { %1977 = vmatmul.mubr.msk.f32.vlgmr.msra.gmra.mrb[0].mxu1 %vm38_vm0, %v77_v35 }
 0x140   :  { %1981 = vmatprep.mubr.msk.f32.mxu1 %vm2259_vm1, %v2258_v36 }
 0x212   :  { %v2350_v37 = vpop.f32.mrb[0].mxu1 }
 0x213   :  { %248 = vrot.lane.b32.xlu1 %v2350_v37, %s2260_s7  ;;  %v2353_v38 = vpop.f32.mrb[1].mxu1 }
 0x214   :  { %170 = vrot.lane.b32.xlu0 %v2353_v38, %s2260_s7 }
 0x285   :  { %v249_v40 = vpop.permute.xlu1 %248 }
 0x286   :  { %v171_v39 = vpop.permute.xlu0 %170 }
 0x287   :  { %1980 = vmatpush3.xpose.msk.msra.mxu1 %vm172_vm2, %v171_v39 }
 0x288   :  { %1984 = vmatprep.subr.mxu1 %v2258_v36 }
 0x28a   :  { %1982 = vmatmul.mubr.msk.f32.vlgmr.msra.gmra.mrb[2].mxu1 %vm172_vm2, %v2353_v38 }
 0x28b   :  { %1985 = vmatpush3.xpose.msk.msra.mxu1 %vm172_vm2, %v249_v40  ;;  %1986 = vmatprep.mubr.msk.f32.mxu1 %vm2259_vm1, %v2258_v36 }
 0x28c   :  { %1994 = vmatprep.subr.mxu1 %v2258_v36 }
 0x28e   :  { %1987 = vmatmul.mubr.msk.f32.vlgmr.msra.gmra.mrb[4].mxu1 %vm172_vm2, %v2350_v37 }
 0x28f   :  { %1996 = vmatprep.mubr.msk.f32.mxu1 %vm2259_vm1, %v2258_v36 }
 0x35d   :  { %v243_v45 = vpop.f32.mrb[2].mxu1 }
 0x35e   :  { %v244_v46 = vadd.f32 %v243_v45, %v2369_v44  ;;  %v1983_v47 = vpop.f32.mrb[3].mxu1 }
 0x360   :  { %v324_v48 = vsel %vm172_vm2, %v244_v46, -inf }
 0x361   :  { %325 = vmax.xlane.f32.xlu1 %v324_v48  ;;  %v320_v49 = vpop.f32.mrb[4].mxu1 }
 0x362   :  { %v321_v50 = vadd.f32 %v320_v49, %v2369_v44  ;;  %v1988_v51 = vpop.f32.mrb[5].mxu1 }
 0x364   :  { %v327_v52 = vsel %vm172_vm2, %v321_v50, -inf }
 0x365   :  { %328 = vmax.xlane.f32.xlu0 %v327_v52 }
 0x372   :  { %422 = vrot.lane.b32.xlu1 %v2350_v37, %s2261_s8 }
 0x376   :  { %500 = vrot.lane.b32.xlu1 %v2353_v38, %s2262_s9 }
 0x37a   :  { %578 = vrot.lane.b32.xlu1 %v2350_v37, %s2262_s9 }
 0x37b   :  { %346 = vrot.lane.b32.xlu0 %v2353_v38, %s2261_s8 }
 0x3ee   :  { %v326_v53 = vpop.xlane.xlu1 %325 }
 0x3ef   :  { %v330_v54 = vsub.f32 %v244_v46, %v326_v53 }
 0x3f1   :  { %v332_v55 = vmul.f32 1.442695, %v330_v54 }
 0x3f2   :  { %v423_v56 = vpop.permute.xlu1 %422  ;;  %v329_v57 = vpop.xlane.xlu0 %328 }
 0x3f3   :  { %2194 = vpow2.f32 %v332_v55  ;;  %v331_v58 = vsub.f32 %v321_v50, %v329_v57  ;;  %1995 = vmatpush3.msra.mxu1 %v423_v56 }
 0x3f4   :  { %2004 = vmatprep.subr.mxu1 %v2258_v36 }
 0x3f5   :  { %v334_v59 = vmul.f32 1.442695, %v331_v58 }
 0x3f6   :  { %v347_v60 = vpop.permute.xlu0 %346  ;;  %v501_v3 = vpop.permute.xlu1 %500 }
 0x3f7   :  { %2196 = vpow2.f32 %v334_v59  ;;  %1990 = vmatpush3.msra.mxu0 %v347_v60 }
 0x3f8   :  { %1999 = vmatprep.subr.mxu0 %v2258_v36 }
 0x3fa   :  { %v579_v4 = vpop.permute.xlu1 %578 }
 0x3fd   :  { %v2195_v61 = vpop.eup %2194 }
 0x3fe   :  { %v336_v62 = vsel %vm172_vm2, %v2195_v61, 0.0 }
 0x3ff   :  { %337 = vadd.xlane.f32.xlu0 %v336_v62 }
 0x401   :  { %v2197_v63 = vpop.eup %2196 }
 0x402   :  { %v339_v2 = vsel %vm172_vm2, %v2197_v63, 0.0 }
 0x403   :  { %340 = vadd.xlane.f32.xlu1 %v339_v2 }
 0x414   :  { %576 = vrot.lane.b32.xlu1 %v2350_v37, %s2263_s10 }
 0x415   :  { %498 = vrot.lane.b32.xlu0 %v2353_v38, %s2263_s10 }
 0x48c   :  { %v338_v5 = vpop.xlane.xlu0 %337 }
 0x48d   :  { %2198 = vrcp.f32 %v338_v5 }
 0x490   :  { %v341_v6 = vpop.xlane.xlu1 %340  ;;  %v499_v11 = vpop.permute.xlu0 %498 }
 0x491   :  { %2200 = vrcp.f32 %v341_v6 }
 0x494   :  { %v577_v12 = vpop.permute.xlu1 %576 }
 0x497   :  { %v2199_v7 = vpop.eup %2198 }
 0x498   :  { %v344_v8 = vmul.f32 %v2199_v7, %v2195_v61 }
 0x49a   :  { %1992 = vmatmul.mubr.msk.f32.vlgmr.msra.gmra.mrb[0].mxu0 %vm172_vm2, %v344_v8 }
 0x49b   :  { %v2201_v9 = vpop.eup %2200  ;;  %2000 = vmatpush3.xpose.msk.msra.mxu0 %vm172_vm2, %v501_v3  ;;  %2001 = vmatprep.mubr.msk.f32.mxu0 %vm2259_vm1, %v2258_v36 }
 0x49c   :  { %v345_v10 = vmul.f32 %v2201_v9, %v2197_v63  ;;  %2009 = vmatprep.subr.mxu0 %v2258_v36 }
 0x49e   :  { %1997 = vmatmul.mubr.msk.f32.vlgmr.msra.gmra.mrb[6].mxu1 %vm172_vm2, %v345_v10  ;;  %2002 = vmatmul.mubr.msk.f32.vlgmr.msra.gmra.mrb[2].mxu0 %vm172_vm2, %v499_v11 }
 0x49f   :  { %2005 = vmatpush3.xpose.msk.msra.mxu1 %vm172_vm2, %v579_v4  ;;  %2006 = vmatprep.mubr.msk.f32.mxu1 %vm2259_vm1, %v2258_v36 }
 0x4a0   :  { %2014 = vmatprep.subr.mxu1 %v2258_v36  ;;  %2011 = vmatprep.mubr.msk.f32.mxu0 %vm2259_vm1, %v2258_v36 }
 0x4a2   :  { %2007 = vmatmul.mubr.msk.f32.vlgmr.msra.gmra.mrb[8].mxu1 %vm172_vm2, %v577_v12 }
 0x4a3   :  { %2016 = vmatprep.mubr.msk.f32.mxu1 %vm2259_vm1, %v2258_v36 }
 0x56d   :  { %v2401_v13 = vpop.f32.mrb[0].mxu0 }
 0x56e   :  { %v1993_v14 = vpop.f32.mrb[1].mxu0 }
 0x571   :  { %v2403_v15 = vpop.f32.mrb[6].mxu1  ;;  %v572_v16 = vpop.f32.mrb[2].mxu0 }
 0x572   :  { %v573_v17 = vadd.f32 %v572_v16, %v2369_v44  ;;  %v1998_v18 = vpop.f32.mrb[7].mxu1  ;;  %v2003_v19 = vpop.f32.mrb[3].mxu0 }
 0x574   :  { %v654_v20 = vsel %vm172_vm2, %v573_v17, -inf }
 0x575   :  { %655 = vmax.xlane.f32.xlu0 %v654_v20  ;;  %v650_v21 = vpop.f32.mrb[8].mxu1 }
 0x576   :  { %v651_v22 = vadd.f32 %v650_v21, %v2369_v44  ;;  %v2008_v23 = vpop.f32.mrb[9].mxu1 }
 0x578   :  { %v657_v24 = vsel %vm172_vm2, %v651_v22, -inf }
 0x579   :  { %658 = vmax.xlane.f32.xlu1 %v657_v24 }
 0x58a   :  { %752 = vrot.lane.b32.xlu1 %v2350_v37, %s2264_s11 }
 0x58b   :  { %676 = vrot.lane.b32.xlu0 %v2353_v38, %s2264_s11 }
 0x58e   :  { %830 = vrot.lane.b32.xlu1 %v2353_v38, %s2265_s12 }
 0x592   :  { %908 = vrot.lane.b32.xlu1 %v2350_v37, %s2265_s12 }
 0x596   :  { %906 = vrot.lane.b32.xlu1 %v2350_v37, %s2266_s13 }
 0x602   :  { %v656_v25 = vpop.xlane.xlu0 %655 }
 0x603   :  { %v660_v26 = vsub.f32 %v573_v17, %v656_v25 }
 0x605   :  { %v662_v27 = vmul.f32 1.442695, %v660_v26 }
 0x606   :  { %v677_v28 = vpop.permute.xlu0 %676  ;;  %v659_v29 = vpop.xlane.xlu1 %658 }
 0x607   :  { %2202 = vpow2.f32 %v662_v27  ;;  %v661_v30 = vsub.f32 %v651_v22, %v659_v29  ;;  %2010 = vmatpush3.msra.mxu0 %v677_v28 }
 0x608   :  { %2019 = vmatprep.subr.mxu0 %v2258_v36 }
 0x609   :  { %v664_v31 = vmul.f32 1.442695, %v661_v30 }
 0x60a   :  { %v753_v32 = vpop.permute.xlu1 %752 }
 0x60b   :  { %2204 = vpow2.f32 %v664_v31  ;;  %2015 = vmatpush3.msra.mxu1 %v753_v32 }
 0x60c   :  { %2024 = vmatprep.subr.mxu1 %v2258_v36 }
 0x60e   :  { %v831_v42 = vpop.permute.xlu1 %830 }
 0x611   :  { %v2203_v33 = vpop.eup %2202 }
 0x612   :  { %v666_v34 = vsel %vm172_vm2, %v2203_v33, 0.0  ;;  %v909_v47 = vpop.permute.xlu1 %908 }
 0x613   :  { %667 = vadd.xlane.f32.xlu0 %v666_v34 }
 0x615   :  { %v2205_v35 = vpop.eup %2204 }
 0x616   :  { %v669_v39 = vsel %vm172_vm2, %v2205_v35, 0.0  ;;  %v907_v50 = vpop.permute.xlu1 %906 }
 0x617   :  { %670 = vadd.xlane.f32.xlu0 %v669_v39 }
 0x62d   :  { %828 = vrot.lane.b32.xlu0 %v2353_v38, %s2266_s13 }
 0x6a0   :  { %v668_v40 = vpop.xlane.xlu0 %667 }
 0x6a1   :  { %2206 = vrcp.f32 %v668_v40 }
 0x6a4   :  { %v671_v41 = vpop.xlane.xlu0 %670 }
 0x6a5   :  { %2208 = vrcp.f32 %v671_v41 }
 0x6a8   :  { %v829_v49 = vpop.permute.xlu0 %828 }
 0x6ab   :  { %v2207_v43 = vpop.eup %2206 }
 0x6ac   :  { %v674_v45 = vmul.f32 %v2207_v43, %v2203_v33 }
 0x6ae   :  { %2012 = vmatmul.mubr.msk.f32.vlgmr.msra.gmra.mrb[4].mxu0 %vm172_vm2, %v674_v45 }
 0x6af   :  { %v2209_v46 = vpop.eup %2208  ;;  %2020 = vmatpush3.xpose.msk.msra.mxu0 %vm172_vm2, %v831_v42  ;;  %2021 = vmatprep.mubr.msk.f32.mxu0 %vm2259_vm1, %v2258_v36 }
 0x6b0   :  { %v675_v48 = vmul.f32 %v2209_v46, %v2205_v35  ;;  %2029 = vmatprep.subr.mxu0 %v2258_v36 }
 0x6b2   :  { %2017 = vmatmul.mubr.msk.f32.vlgmr.msra.gmra.mrb[10].mxu1 %vm172_vm2, %v675_v48  ;;  %2022 = vmatmul.mubr.msk.f32.vlgmr.msra.gmra.mrb[6].mxu0 %vm172_vm2, %v829_v49 }
 0x6b3   :  { %2025 = vmatpush3.xpose.msk.msra.mxu1 %vm172_vm2, %v909_v47  ;;  %2026 = vmatprep.mubr.msk.f32.mxu1 %vm2259_vm1, %v2258_v36 }
 0x6b4   :  { %2034 = vmatprep.subr.mxu1 %v2258_v36  ;;  %2031 = vmatprep.mubr.msk.f32.mxu0 %vm2259_vm1, %v2258_v36 }
 0x6b6   :  { %2027 = vmatmul.mubr.msk.f32.vlgmr.msra.gmra.mrb[12].mxu1 %vm172_vm2, %v907_v50 }
 0x6b7   :  { %2036 = vmatprep.mubr.msk.f32.mxu1 %vm2259_vm1, %v2258_v36 }
 0x781   :  { %v2435_v51 = vpop.f32.mrb[4].mxu0 }
 0x782   :  { %v2013_v52 = vpop.f32.mrb[5].mxu0 }
 0x785   :  { %v2437_v53 = vpop.f32.mrb[10].mxu1  ;;  %v902_v54 = vpop.f32.mrb[6].mxu0 }
 0x786   :  { %v903_v55 = vadd.f32 %v902_v54, %v2369_v44  ;;  %v2018_v56 = vpop.f32.mrb[11].mxu1  ;;  %v2023_v57 = vpop.f32.mrb[7].mxu0 }
 0x787   :  { %v34_v56 = vld [vmem:[%s2611_s2 + $0x8] sm:$0xff] }
 0x788   :  { %v984_v58 = vsel %vm172_vm2, %v903_v55, -inf }
 0x789   :  { %985 = vmax.xlane.f32.xlu0 %v984_v58  ;;  %v980_v59 = vpop.f32.mrb[12].mxu1  ;;  %v36_v58 = vld [vmem:[%s2611_s2 + $0x28] sm:$0xff] }
 0x78a   :  { %v981_v60 = vadd.f32 %v980_v59, %v2369_v44  ;;  %v2028_v61 = vpop.f32.mrb[13].mxu1  ;;  %v37_v59 = vld [vmem:[%s2611_s2 + $0x38] sm:$0xff] }
 0x78c   :  { %v987_v62 = vsel %vm172_vm2, %v981_v60, -inf }
 0x78d   :  { %988 = vmax.xlane.f32.xlu1 %v987_v62 }
 0x79e   :  { %1082 = vrot.lane.b32.xlu1 %v2350_v37, %s2267_s14 }
 0x79f   :  { %1006 = vrot.lane.b32.xlu0 %v2353_v38, %s2267_s14 }
 0x7a2   :  { %1160 = vrot.lane.b32.xlu1 %v2353_v38, %s2268_s15 }
 0x7a6   :  { %1238 = vrot.lane.b32.xlu1 %v2350_v37, %s2268_s15 }
 0x7aa   :  { %1236 = vrot.lane.b32.xlu1 %v2350_v37, %s2269_s16 }
 0x816   :  { %v986_v63 = vpop.xlane.xlu0 %985 }
 0x817   :  { %v990_v2 = vsub.f32 %v903_v55, %v986_v63 }
 0x819   :  { %v992_v3 = vmul.f32 1.442695, %v990_v2 }
 0x81a   :  { %v1007_v4 = vpop.permute.xlu0 %1006  ;;  %v989_v5 = vpop.xlane.xlu1 %988 }
 0x81b   :  { %2210 = vpow2.f32 %v992_v3  ;;  %v991_v6 = vsub.f32 %v981_v60, %v989_v5  ;;  %2030 = vmatpush3.msra.mxu0 %v1007_v4  ;;  %v2128_v60 = vpack.c.bf16 %v37_v59, %v36_v58  ;;  %v1751_v58 = vld [vmem:[%s2612_s3 + $0x18] sm:$0xff] }
 0x81c   :  { %2039 = vmatprep.subr.mxu0 %v2258_v36 }
 0x81d   :  { %v994_v7 = vmul.f32 1.442695, %v991_v6 }
 0x81e   :  { %v1083_v8 = vpop.permute.xlu1 %1082 }
 0x81f   :  { %2212 = vpow2.f32 %v994_v7  ;;  %2035 = vmatpush3.msra.mxu1 %v1083_v8 }
 0x820   :  { %2044 = vmatprep.subr.mxu1 %v2258_v36 }
 0x822   :  { %v1161_v17 = vpop.permute.xlu1 %1160 }
 0x825   :  { %v2211_v9 = vpop.eup %2210 }
 0x826   :  { %v996_v10 = vsel %vm172_vm2, %v2211_v9, 0.0  ;;  %v1239_v21 = vpop.permute.xlu1 %1238 }
 0x827   :  { %997 = vadd.xlane.f32.xlu0 %v996_v10 }
 0x829   :  { %v2213_v11 = vpop.eup %2212 }
 0x82a   :  { %v999_v12 = vsel %vm172_vm2, %v2213_v11, 0.0  ;;  %v1237_v24 = vpop.permute.xlu1 %1236 }
 0x82b   :  { %1000 = vadd.xlane.f32.xlu0 %v999_v12 }
 0x841   :  { %1158 = vrot.lane.b32.xlu0 %v2353_v38, %s2269_s16 }
 0x8b4   :  { %v998_v14 = vpop.xlane.xlu0 %997 }
 0x8b5   :  { %2214 = vrcp.f32 %v998_v14 }
 0x8b8   :  { %v1001_v16 = vpop.xlane.xlu0 %1000 }
 0x8b9   :  { %2216 = vrcp.f32 %v1001_v16 }
 0x8bc   :  { %v1159_v23 = vpop.permute.xlu0 %1158 }
 0x8bf   :  { %v2215_v18 = vpop.eup %2214 }
 0x8c0   :  { %v1004_v19 = vmul.f32 %v2215_v18, %v2211_v9 }
 0x8c2   :  { %2032 = vmatmul.mubr.msk.f32.vlgmr.msra.gmra.mrb[8].mxu0 %vm172_vm2, %v1004_v19 }
 0x8c3   :  { %v2217_v20 = vpop.eup %2216  ;;  %2040 = vmatpush3.xpose.msk.msra.mxu0 %vm172_vm2, %v1161_v17  ;;  %2041 = vmatprep.mubr.msk.f32.mxu0 %vm2259_vm1, %v2258_v36  ;;  %v1891_v17 = vld [vmem:[%s2613_s4 + $0x4] ss:$0 sm:$0xff] }
 0x8c4   :  { %v1005_v22 = vmul.f32 %v2217_v20, %v2213_v11  ;;  %2049 = vmatprep.subr.mxu0 %v2258_v36 }
 0x8c6   :  { %2037 = vmatmul.mubr.msk.f32.vlgmr.msra.gmra.mrb[14].mxu1 %vm172_vm2, %v1005_v22  ;;  %2042 = vmatmul.mubr.msk.f32.vlgmr.msra.gmra.mrb[10].mxu0 %vm172_vm2, %v1159_v23 }
 0x8c7   :  { %2045 = vmatpush3.xpose.msk.msra.mxu1 %vm172_vm2, %v1239_v21  ;;  %2046 = vmatprep.mubr.msk.f32.mxu1 %vm2259_vm1, %v2258_v36 }
 0x8c8   :  { %2054 = vmatprep.subr.mxu1 %v2258_v36  ;;  %2051 = vmatprep.mubr.msk.f32.mxu0 %vm2259_vm1, %v2258_v36 }
 0x8ca   :  { %2047 = vmatmul.mubr.msk.f32.vlgmr.msra.gmra.mrb[16].mxu1 %vm172_vm2, %v1237_v24 }
 0x8cb   :  { %2056 = vmatprep.mubr.msk.f32.mxu1 %vm2259_vm1, %v2258_v36 }
 0x995   :  { %v1078_v25 = vpop.f32.mrb[8].mxu0 }
 0x996   :  { %v2033_v26 = vpop.f32.mrb[9].mxu0 }
 0x999   :  { %v1154_v27 = vpop.f32.mrb[14].mxu1  ;;  %v1232_v28 = vpop.f32.mrb[10].mxu0 }
 0x99a   :  { %v1233_v29 = vadd.f32 %v1232_v28, %v2369_v44  ;;  %v2038_v30 = vpop.f32.mrb[15].mxu1  ;;  %v2043_v31 = vpop.f32.mrb[11].mxu0 }
 0x99c   :  { %v1314_v32 = vsel %vm172_vm2, %v1233_v29, -inf }
 0x99d   :  { %1315 = vmax.xlane.f32.xlu0 %v1314_v32  ;;  %v1310_v33 = vpop.f32.mrb[16].mxu1  ;;  %v30_v32 = vld [vmem:[%s2611_s2] sm:$0xff] }
 0x99e   :  { %v1311_v34 = vadd.f32 %v1310_v33, %v2369_v44  ;;  %v2048_v35 = vpop.f32.mrb[17].mxu1  ;;  %v31_v33 = vld [vmem:[%s2611_s2 + $0x10] sm:$0xff] }
 0x99f   :  { %v32_v35 = vld [vmem:[%s2611_s2 + $0x20] sm:$0xff] }
 0x9a0   :  { %v1317_v39 = vsel %vm172_vm2, %v1311_v34, -inf }
 0x9a1   :  { %1318 = vmax.xlane.f32.xlu1 %v1317_v39  ;;  %v33_v39 = vld [vmem:[%s2611_s2 + $0x30] sm:$0xff] }
 0x9b2   :  { %1412 = vrot.lane.b32.xlu1 %v2350_v37, %s2270_s17 }
 0x9b6   :  { %1490 = vrot.lane.b32.xlu1 %v2435_v51, %s2271_s18 }
 0x9ba   :  { %1492 = vrot.lane.b32.xlu1 %v2437_v53, %s2271_s18 }
 0x9be   :  { %1500 = vrot.lane.b32.xlu1 %v1154_v27, %s2272_s19 }
 0xa2a   :  { %v1316_v36 = vpop.xlane.xlu0 %1315 }
 0xa2b   :  { %v1320_v40 = vsub.f32 %v1233_v29, %v1316_v36  ;;  %v2136_v36 = vpack.c.bf16 %v33_v39, %v32_v35 }
 0xa2d   :  { %v1322_v41 = vmul.f32 1.442695, %v1320_v40  ;;  %v1748_v40 = vld [vmem:[%s2612_s3] sm:$0xff] }
 0xa2e   :  { %v1319_v44 = vpop.xlane.xlu1 %1318 }
 0xa2f   :  { %2218 = vpow2.f32 %v1322_v41  ;;  %v1321_v42 = vsub.f32 %v1311_v34, %v1319_v44  ;;  %v2132_v34 = vpack.c.bf16 %v31_v33, %v30_v32  ;;  %v1749_v41 = vld [vmem:[%s2612_s3 + $0x8] sm:$0xff] }
 0xa30   :  { %v2140_v44 = vpack.c.bf16 %v1749_v41, %v1748_v40  ;;  %v1899_v41 = vld [vmem:[%s2613_s4 + $0x5] ss:$0 sm:$0xff] }
 0xa31   :  { %v1324_v43 = vmul.f32 1.442695, %v1321_v42 }
 0xa32   :  { %v1413_v45 = vpop.permute.xlu1 %1412 }
 0xa33   :  { %2220 = vpow2.f32 %v1324_v43  ;;  %2055 = vmatpush3.msra.mxu1 %v1413_v45 }
 0xa36   :  { %v1491_v3 = vpop.permute.xlu1 %1490 }
 0xa37   :  { %v1512_v6 = vsel %vm172_vm2, %v2401_v13, %v1491_v3 }
 0xa39   :  { %v2219_v37 = vpop.eup %2218 }
 0xa3a   :  { %v1326_v46 = vsel %vm172_vm2, %v2219_v37, 0.0  ;;  %v1493_v4 = vpop.permute.xlu1 %1492 }
 0xa3b   :  { %1327 = vadd.xlane.f32.xlu0 %v1326_v46  ;;  %v1513_v11 = vsel %vm172_vm2, %v2403_v15, %v1493_v4  ;;  %v1756_v4 = vld [vmem:[%s2612_s3 + $0x40] sm:$0xff] }
 0xa3d   :  { %v2221_v47 = vpop.eup %2220 }
 0xa3e   :  { %v1329_v48 = vsel %vm172_vm2, %v2221_v47, 0.0  ;;  %v1501_v7 = vpop.permute.xlu1 %1500 }
 0xa3f   :  { %1330 = vadd.xlane.f32.xlu0 %v1329_v48  ;;  %v1516_v12 = vsel %vm1514_vm5, %v1513_v11, %v1501_v7  ;;  %v1758_v7 = vld [vmem:[%s2612_s3 + $0x50] sm:$0xff]  ;;  %v1761_v11 = vld [vmem:[%s2612_s3 + $0x68] sm:$0xff] }
 0xa55   :  { %1336 = vrot.lane.b32.xlu0 %v2353_v38, %s2270_s17  ;;  %v35_v38 = vld [vmem:[%s2611_s2 + $0x18] sm:$0xff] }
 0xa56   :  { %v2124_v57 = vpack.c.bf16 %v35_v38, %v34_v56 }
 0xa58   :  { %2125 = vmatprep.subr.bf16.mxu1 %v2124_v57 }
 0xa59   :  { %1498 = vrot.lane.b32.xlu0 %v1078_v25, %s2272_s19 }
 0xac8   :  { %v1328_v49 = vpop.xlane.xlu0 %1327 }
 0xac9   :  { %2222 = vrcp.f32 %v1328_v49  ;;  %v1894_v49 = vld [vmem:[%s2613_s4 + $0x2] ss:$0 sm:$0xff] }
 0xacc   :  { %v1331_v50 = vpop.xlane.xlu0 %1330 }
 0xacd   :  { %2224 = vrcp.f32 %v1331_v50 }
 0xad0   :  { %v1337_v51 = vpop.permute.xlu0 %1336 }
 0xad1   :  { %2050 = vmatpush3.msra.mxu0 %v1337_v51  ;;  %v1895_v51 = vld [vmem:[%s2613_s4 + $0x3] ss:$0 sm:$0xff] }
 0xad2   :  { %2141 = vmatprep.subr.bf16.mxu0 %v2140_v44 }
 0xad3   :  { %v2223_v52 = vpop.eup %2222 }
 0xad4   :  { %v1334_v53 = vmul.f32 %v2223_v52, %v2219_v37  ;;  %v1499_v5 = vpop.permute.xlu0 %1498 }
 0xad5   :  { %v1515_v8 = vsel %vm1514_vm5, %v1512_v6, %v1499_v5  ;;  %v1757_v5 = vld [vmem:[%s2612_s3 + $0x48] sm:$0xff] }
 0xad6   :  { %2052 = vmatmul.mubr.msk.f32.vlgmr.msra.gmra.mrb[12].mxu0 %vm172_vm2, %v1334_v53  ;;  %v2156_v6 = vpack.c.bf16 %v1757_v5, %v1756_v4 }
 0xad7   :  { %v2225_v54 = vpop.eup %2224  ;;  %2143 = vmatpush3.bf16.msra.mxu0 %v2140_v44 }
 0xad8   :  { %v1335_v55 = vmul.f32 %v2225_v54, %v2221_v47 }
 0xada   :  { %2057 = vmatmul.mubr.msk.f32.vlgmr.msra.gmra.mrb[18].mxu1 %vm172_vm2, %v1335_v55 }
 0xadb   :  { %2127 = vmatpush3.bf16.msra.mxu1 %v2124_v57  ;;  %v1750_v57 = vld [vmem:[%s2612_s3 + $0x10] sm:$0xff] }
 0xadc   :  { %2129 = vmatprep.subr.bf16.mxu1 %v2128_v60  ;;  %v2144_v59 = vpack.c.bf16 %v1751_v58, %v1750_v57 }
 0xade   :  { %2145 = vmatprep.subr.bf16.mxu0 %v2144_v59 }
 0xadf   :  { %2131 = vmatpush3.bf16.msra.mxu1 %v2128_v60  ;;  %2147 = vmatpush3.bf16.msra.mxu0 %v2144_v59  ;;  %v1752_v60 = vld [vmem:[%s2612_s3 + $0x20] sm:$0xff] }
 0xae0   :  { %2133 = vmatprep.subr.bf16.mxu1 %v2132_v34 }
 0xba9   :  { %v1408_v61 = vpop.f32.mrb[12].mxu0 }
 0xbaa   :  { %1506 = vrot.lane.b32.xlu0 %v1408_v61, %s2273_s27  ;;  %v2053_v62 = vpop.f32.mrb[13].mxu0  ;;  %v1753_v61 = vld [vmem:[%s2612_s3 + $0x28] sm:$0xff] }
 0xbab   :  { %v2148_v62 = vpack.c.bf16 %v1753_v61, %v1752_v60 }
 0xbad   :  { %v1484_v63 = vpop.f32.mrb[18].mxu1  ;;  %2149 = vmatprep.subr.bf16.mxu0 %v2148_v62 }
 0xbae   :  { %1508 = vrot.lane.b32.xlu1 %v1484_v63, %s2273_s27  ;;  %v2058_v2 = vpop.f32.mrb[19].mxu1  ;;  %2151 = vmatpush3.bf16.msra.mxu0 %v2148_v62  ;;  %v1754_v63 = vld [vmem:[%s2612_s3 + $0x30] sm:$0xff] }
 0xbaf   :  { %v1755_v2 = vld [vmem:[%s2612_s3 + $0x38] sm:$0xff] }
 0xbb0   :  { %v2152_v3 = vpack.c.bf16 %v1755_v2, %v1754_v63 }
 0xbb2   :  { %2153 = vmatprep.subr.bf16.mxu0 %v2152_v3 }
 0xbb3   :  { %2155 = vmatpush3.bf16.msra.mxu0 %v2152_v3 }
 0xbb4   :  { %2157 = vmatprep.subr.bf16.mxu0 %v2156_v6 }
 0xbb7   :  { %2159 = vmatpush3.bf16.msra.mxu0 %v2156_v6 }
 0xc1c   :  { %v1507_v9 = vpop.permute.xlu0 %1506 }
 0xc1d   :  { %v1518_v10 = vsel %vm1517_vm4, %v1515_v8, %v1507_v9  ;;  %v1759_v8 = vld [vmem:[%s2612_s3 + $0x58] sm:$0xff] }
 0xc1e   :  { %2067 = vmatprep.mubr.msk.f32.mxu1 %vm38_vm0, %v1518_v10  ;;  %v2160_v9 = vpack.c.bf16 %v1759_v8, %v1758_v7  ;;  %v1760_v10 = vld [vmem:[%s2612_s3 + $0x60] sm:$0xff] }
 0xc20   :  { %v1509_v14 = vpop.permute.xlu1 %1508  ;;  %2161 = vmatprep.subr.bf16.mxu0 %v2160_v9 }
 0xc21   :  { %v1519_v16 = vsel %vm1517_vm4, %v1516_v12, %v1509_v14  ;;  %v2164_v12 = vpack.c.bf16 %v1761_v11, %v1760_v10  ;;  %v1762_v14 = vld [vmem:[%s2612_s3 + $0x70] sm:$0xff]  ;;  %2163 = vmatpush3.bf16.msra.mxu0 %v2160_v9 }
 0xc22   :  { %2068 = vmatmul.mubr.msk.f32.vlgmr.msra.gmra.mrb[20].mxu1 %vm38_vm0, %v1519_v16  ;;  %v1763_v16 = vld [vmem:[%s2612_s3 + $0x78] sm:$0xff] }
 0xc23   :  { %2135 = vmatpush3.bf16.msra.mxu1 %v2132_v34  ;;  %2165 = vmatprep.subr.bf16.mxu0 %v2164_v12 }
 0xc24   :  { %2137 = vmatprep.subr.bf16.mxu1 %v2136_v36 }
 0xc25   :  { %2167 = vmatpush3.bf16.msra.mxu0 %v2164_v12 }
 0xc27   :  { %2139 = vmatpush3.bf16.msra.mxu1 %v2136_v36 }
 0xcf5   :  { %v2069_v13 = vpop.f32.mrb[20].mxu1 }
 0xcf6   :  { %v1602_v18 = vadd.f32 %v2069_v13, %v1891_v17  ;;  %v1596_v19 = vpop.f32.mrb[21].mxu1  ;;  %v1896_v13 = vld [vmem:[%s2613_s4 + $0x6] ss:$0 sm:$0xff] }
 0xcf7   :  { %v1597_v20 = vadd.f32 %v1891_v17, %v1596_v19  ;;  %v2168_v17 = vpack.c.bf16 %v1763_v16, %v1762_v14 }
 0xcf8   :  { %v2505_v21 = vadd.f32 %v1602_v18, %v2314_v1 }
 0xcf9   :  { %v2508_v22 = vadd.f32 %v1597_v20, %v2309_v0  ;;  %2169 = vmatprep.subr.bf16.mxu0 %v2168_v17 }
 0xcfa   :  { %v1610_v15 = vsel %vm38_vm0, %v2505_v21, 0.0  ;;  %2171 = vmatpush3.bf16.msra.mxu0 %v2168_v17 }
 0xcfb   :  { %1611 = vadd.xlane.f32.xlu1 %v1610_v15  ;;  %v1607_v23 = vsel %vm38_vm0, %v2508_v22, 0.0 }
 0xcfc   :  { %1608 = vadd.xlane.f32.xlu0 %v1607_v23 }
 0xd88   :  { %v1612_v24 = vpop.xlane.xlu1 %1611 }
 0xd89   :  { %v1614_v25 = vmul.f32 0.03125, %v1612_v24  ;;  %v1609_v26 = vpop.xlane.xlu0 %1608 }
 0xd8a   :  { %v1613_v27 = vmul.f32 0.03125, %v1609_v26 }
 0xd8b   :  { %v1616_v28 = vsub.f32 %v2505_v21, %v1614_v25 }
 0xd8c   :  { %v1615_v1 = vsub.f32 %v2508_v22, %v1613_v27 }
 0xd8d   :  { %v1618_v30 = vmul.f32 %v1616_v28, %v1616_v28 }
 0xd8e   :  { %v1617_v29 = vmul.f32 %v1615_v1, %v1615_v1 }
 0xd8f   :  { %v1622_v31 = vsel %vm38_vm0, %v1618_v30, 0.0 }
 0xd90   :  { %v1619_v0 = vsel %vm38_vm0, %v1617_v29, 0.0 }
 0xd91   :  { %1620 = vadd.xlane.f32.xlu0 %v1619_v0 }
 0xd95   :  { %1623 = vadd.xlane.f32.xlu0 %v1622_v31 }
 0xe1e   :  { %v1621_v42 = vpop.xlane.xlu0 %1620 }
 0xe1f   :  { %v1625_v43 = vmul.f32 0.03125, %v1621_v42 }
 0xe21   :  { %v1627_v45 = vadd.f32 1e-05, %v1625_v43 }
 0xe22   :  { %v1624_v37 = vpop.xlane.xlu0 %1623 }
 0xe23   :  { %2226 = vrsqrt.f32 %v1627_v45  ;;  %v1626_v46 = vmul.f32 0.03125, %v1624_v37 }
 0xe25   :  { %v1628_v47 = vadd.f32 1e-05, %v1626_v46 }
 0xe27   :  { %2228 = vrsqrt.f32 %v1628_v47 }
 0xe2d   :  { %v2227_v48 = vpop.eup %2226 }
 0xe2e   :  { %v1631_v50 = vmul.f32 %v2227_v48, %v1615_v1 }
 0xe30   :  { %v1637_v52 = vmul.f32 %v1894_v49, %v1631_v50 }
 0xe31   :  { %v2229_v53 = vpop.eup %2228 }
 0xe32   :  { %v1632_v54 = vmul.f32 %v2229_v53, %v1616_v28  ;;  %v1643_v55 = vadd.f32 %v1895_v51, %v1637_v52 }
 0xe34   :  { %v1638_v56 = vmul.f32 %v1894_v49, %v1632_v54  ;;  %2078 = vmatprep.mubr.msk.f32.mxu1 %vm38_vm0, %v1643_v55 }
 0xe36   :  { %v1644_v38 = vadd.f32 %v1895_v51, %v1638_v56 }
 0xe38   :  { %2079 = vmatmul.mubr.msk.f32.vlgmr.msra.gmra.mrb[22].mxu1 %vm38_vm0, %v1644_v38 }
 0xf0b   :  { %v2080_v18 = vpop.f32.mrb[22].mxu1 }
 0xf0c   :  { %v1727_v19 = vadd.f32 %v2080_v18, %v1896_v13  ;;  %v1721_v20 = vpop.f32.mrb[23].mxu1 }
 0xf0d   :  { %v1722_v15 = vadd.f32 %v1896_v13, %v1721_v20 }
 0xf0e   :  { %v1731_v23 = vmul.f32 %v1727_v19, %v1727_v19  ;;  %v1735_v39 = vmul.f32 0.5, %v1727_v19 }
 0xf0f   :  { %v1730_v24 = vmul.f32 %v1722_v15, %v1722_v15  ;;  %v1734_v34 = vmul.f32 0.5, %v1722_v15 }
 0xf10   :  { %v1733_v25 = vmul.f32 %v1731_v23, %v1727_v19 }
 0xf11   :  { %v1732_v26 = vmul.f32 %v1730_v24, %v1722_v15 }
 0xf12   :  { %v1737_v27 = vmul.f32 0.044715, %v1733_v25 }
 0xf13   :  { %v1736_v28 = vmul.f32 0.044715, %v1732_v26 }
 0xf14   :  { %v1739_v1 = vadd.f32 %v1737_v27, %v1727_v19 }
 0xf15   :  { %v1738_v29 = vadd.f32 %v1736_v28, %v1722_v15 }
 0xf16   :  { %v1741_v0 = vmul.f32 0.7978845, %v1739_v1 }
 0xf17   :  { %v1740_v30 = vmul.f32 0.7978845, %v1738_v29 }
 0xf18   :  { %2230 = vtanh.f32 %v1741_v0 }
 0xf19   :  { %2232 = vtanh.f32 %v1740_v30 }
 0xf22   :  { %v2231_v31 = vpop.eup %2230 }
 0xf23   :  { %v2233_v32 = vpop.eup %2232  ;;  %v1745_v33 = vadd.f32 1.0, %v2231_v31 }
 0xf24   :  { %v1744_v35 = vadd.f32 1.0, %v2233_v32 }
 0xf25   :  { %v1747_v40 = vmul.f32 %v1745_v33, %v1735_v39 }
 0xf26   :  { %v1746_v36 = vmul.f32 %v1744_v35, %v1734_v34 }
 0xf28   :  { %2113 = vmatprep.mubr.f32.mxu0 %v1746_v36 }
 0xf29   :  { %2114 = vmatmul.mubr.f32.vlgmr.msra.gmra.mrb[14].mxu0 %v1747_v40 }
 0xffc   :  { %v2115_v44 = vpop.f32.mrb[14].mxu0 }
 0xffd   :  { %v1840_v42 = vadd.f32 %v2115_v44, %v1899_v41  ;;  %v1834_v43 = vpop.f32.mrb[15].mxu0 }
 0xffe   :  { %v1835_v45 = vadd.f32 %v1899_v41, %v1834_v43 }
 0xfff   :  { %v1844_v37 = vadd.f32 %v1840_v42, %v2505_v21 }
0x1000   :  { %v1843_v46 = vadd.f32 %v1835_v45, %v2508_v22 }
0x1001   :  { %1846 = vst.msk [vmem:[#allocation2 + $0x8] sm:$0xff] %vm38_vm0, %v1844_v37 }
0x1002   :  { %1845 = vst.msk [vmem:[#allocation2] sm:$0xff] %vm38_vm0, %v1843_v46 }
0x1003   :  { %2245 = shalt.err (!%p2242_p4)
}
0x1004   :  { %s2246_s27 = scalar_lea.hbm %s2614_s5, 256 }
0x1005   :  { %p2247_p5 = scmp.ne.s32.totalorder %s2614_s5, %s2246_s27  ;;  %p2250_p6 = scmp.lt.u32.totalorder %s2246_s27, %s2614_s5 }
0x1007   :  { %p2252_p7 = pnand %p2250_p6, %p2247_p5 }
0x1009   :  { %2255 = shalt.err (!%p2252_p7)
}
0x100a   :  { %s2275_s6 = smov 128  }
0x100b   :  { %1858 = dma.vmem_to_hbm [thread:$0]  %s1853_s24, 256, %s2614_s5, [#allocation3], %s2275_s6, %s2275_s6, %s2271_s18  }
0x100c   :  { %2256 = dma.done.wait [#allocation3], 256  }
0x100d   :  { %2257 = vsyncadd [#allocation3], 4294967040 }
0x100e   :  { %1862 = vsyncpa [#allocation3], 1 }

</bundles_post_ra>
